<compile_context>
chip_gen: v7x
topology: tpu7x:2x2x1
jax: 0.10.0
libtpu: 0.0.40
codegen_flags: <defaults>
</compile_context>

<pallas_src>
import functools
import math
import re

import jax
import jax.numpy as jnp
from jax.experimental import pallas as pl
from jax.experimental.pallas import tpu as pltpu

_MIN_KERNEL_BYTES = 1 << 20  # below this, XLA's fused broadcast-mul already hits roofline


def _chip_generation() -> int:
    """Best-effort TPU generation (5, 6, 7, ...) from device_kind; 0 if unknown."""
    try:
        kind = jax.devices()[0].device_kind
    except Exception:
        return 0
    m = re.search(r"(\d+)", kind)
    return int(m.group(1)) if m else 0


def _target_tile_bytes(gen: int) -> int:
    """Per-buffer block budget; 4 double-buffered tiles stay under scoped-VMEM defaults."""
    if gen >= 7:
        return 6 << 20     # v7x: 3.2 TB/s makes per-step overhead expensive; 24 MiB VMEM
    if gen == 6:
        return 4 << 20     # v6e: 16 MiB VMEM (< 32 MiB scoped default)
    return 2 << 20         # v5e / unknown: 8 MiB VMEM (< 16 MiB scoped default)


def _drop_path_kernel(scale_ref, x_ref, o_ref, *, native_mul: bool):
    """scale_ref: (TB, 1) float32; x_ref/o_ref: (TB, TF) tiles of the flat (B, F) view."""
    x = x_ref[...]
    s = scale_ref[...]
    if native_mul:
        s = s.astype(x.dtype)  # multiply in x's dtype (v6e/v7x VPU has bf16)
    o_ref[...] = (x * s).astype(o_ref.dtype)


def drop_path(x, drop_prob: float = 0.0, training: bool = False, *, key=None,
              donate_x: bool = False, force_kernel: bool = False):
    """JAX/Pallas equivalent of the PyTorch drop_path function (forward)."""
    if drop_prob == 0.0 or not training:
        return x  # identity, exactly like the reference
    if not 0.0 < drop_prob < 1.0:
        raise ValueError(f"drop_prob must be in (0, 1), got {drop_prob}")
    if key is None:
        raise ValueError("drop_path(training=True, drop_prob>0) requires a PRNG `key`.")

    keep_prob = 1.0 - drop_prob
    B = x.shape[0]
    F = math.prod(x.shape[1:]) if x.ndim > 1 else 1

    # Per-sample Bernoulli(keep_prob) mask, PyTorch recipe floor(keep_prob + U[0,1)),
    # computed in float32 regardless of x.dtype (avoids bf16 bias of the drop rate)
    # and pre-folded with 1/keep_prob so the kernel is a single broadcast multiply.
    u = jax.random.uniform(key, (B,), dtype=jnp.float32)
    scale = (jnp.floor(keep_prob + u) * (1.0 / keep_prob)).astype(jnp.float32)

    total_bytes = B * F * x.dtype.itemsize
    lane_aligned = (F % 128 == 0)

    # Fast path: tiny tensors, or feature axes that are not multiples of 128
    # (those lower to masked vst.msk partial stores) -> let XLA fuse it.
    if (not lane_aligned) or (total_bytes < _MIN_KERNEL_BYTES and not force_kernel):
        bshape = (B,) + (1,) * (x.ndim - 1)
        return (x * scale.reshape(bshape)).astype(x.dtype)

    gen = _chip_generation()
    target = _target_tile_bytes(gen)

    x2 = x.reshape(B, F)            # lane-dense flat view (layout plumbing only)
    scale2 = scale.reshape(B, 1)

    itemsize = x2.dtype.itemsize
    sublane_pack = 8 * max(1, 4 // max(1, itemsize))   # 8 f32, 16 bf16, 32 int8

    # Lane-axis tile: as wide as the budget allows at one sublane pack, capped at F.
    tf_cap = max(128, (target // (sublane_pack * itemsize)) // 128 * 128)
    tf = F if F <= tf_cap else tf_cap
    # Then GROW the batch-axis tile (sublane-pack multiples) to reach ~target bytes.
    tb_cap = max(sublane_pack, (target // (tf * itemsize)) // sublane_pack * sublane_pack)
    tb = B if B <= tb_cap else tb_cap

    # Make sure multi-TensorCore chips (v7x) get >= 2 parallel blocks when possible.
    if pl.cdiv(B, tb) * pl.cdiv(F, tf) < 2:
        if F >= 256:
            tf = max(128, ((F // 2) // 128) * 128)
        elif B >= 2 * sublane_pack:
            tb = max(sublane_pack, ((B // 2) // sublane_pack) * sublane_pack)

    grid = (pl.cdiv(B, tb), pl.cdiv(F, tf))

    # Multiply in x's dtype on v6e/v7x (bf16 VPU); keep the f32 promote elsewhere.
    native_mul = (itemsize < 4) and (gen >= 6)

    # TODO(synk): for large tensors at high drop rates, a manual-DMA variant could
    # skip HBM reads of dropped rows (scalar-prefetch mask + pl.when-gated copies).
    out2 = pl.pallas_call(
        functools.partial(_drop_path_kernel, native_mul=native_mul),
        out_shape=jax.ShapeDtypeStruct((B, F), x.dtype),
        grid=grid,
        in_specs=[
            pl.BlockSpec((tb, 1), lambda i, j: (i, 0)),    # per-sample scale (f32)
            pl.BlockSpec((tb, tf), lambda i, j: (i, j)),   # x tile
        ],
        out_specs=pl.BlockSpec((tb, tf), lambda i, j: (i, j)),
        input_output_aliases=({1: 0} if donate_x else {}),
        compiler_params=pltpu.CompilerParams(
            dimension_semantics=("parallel", "parallel"),
        ),
    )(scale2, x2)

    return out2.reshape(x.shape)


class DropPath:
    """Mirror of the PyTorch DropPath module (no trainable parameters)."""

    def __init__(self, drop_prob=None):
        self.drop_prob = drop_prob if drop_prob is not None else 0.0
        self.training = True

    def __call__(self, x, *, key=None):
        return drop_path(x, self.drop_prob, self.training, key=key)


def _reference(x, drop_prob, key):
    """Pure-JAX reference using the same f32 mask recipe as the kernel wrapper."""
    keep_prob = 1.0 - drop_prob
    u = jax.random.uniform(key, (x.shape[0],), dtype=jnp.float32)
    scale = jnp.floor(keep_prob + u) * (1.0 / keep_prob)
    scale = scale.reshape((x.shape[0],) + (1,) * (x.ndim - 1))
    return (x.astype(jnp.float32) * scale).astype(x.dtype)


if __name__ == "__main__":
    root = jax.random.PRNGKey(0)
    kx1, kd1, kx2, kd2, kx3, kd3 = jax.random.split(root, 6)

    drop_prob = 0.25
    module = DropPath(drop_prob)

    # --- 1) Pallas path (forced past the small-tensor fast path): (B,N,D)=(4,8,128) f32 ---
    x1 = jax.random.normal(kx1, (4, 8, 128), dtype=jnp.float32)
    out1 = jax.block_until_ready(drop_path(x1, drop_prob, True, key=kd1, force_kernel=True))
    ref1 = _reference(x1, drop_prob, kd1)
    assert out1.shape == x1.shape and out1.dtype == x1.dtype
    assert jnp.allclose(out1, ref1, atol=1e-6, rtol=1e-6), "f32 kernel mismatch"

    # --- 2) Pallas path, bf16, bigger batch (sublane-packed tb + native-dtype multiply) ---
    x2 = jax.random.normal(kx2, (32, 8, 256), dtype=jnp.bfloat16)
    out2 = jax.block_until_ready(drop_path(x2, drop_prob, True, key=kd2, force_kernel=True))
    ref2 = _reference(x2, drop_prob, kd2)
    assert jnp.allclose(out2.astype(jnp.float32), ref2.astype(jnp.float32),
                        atol=1e-2, rtol=1e-2), "bf16 kernel mismatch"

    # --- 3) non-128-aligned feature axis -> pure-JAX fast path ---
    x3 = jax.random.normal(kx3, (2, 8, 40), dtype=jnp.float32)
    out3 = jax.block_until_ready(module(x3, key=kd3))
    ref3 = _reference(x3, drop_prob, kd3)
    assert jnp.allclose(out3, ref3, atol=1e-6, rtol=1e-6), "fast-path mismatch"

    # --- 4) eval mode: identity ---
    module.training = False
    out4 = jax.block_until_ready(module(x1))
    assert jnp.allclose(out4, x1), "eval mismatch"

    print("KERNEL_OK")
</pallas_src>

<mosaic_0001>
module attributes {stable_mosaic.version = 11 : i64} {
  func.func @_drop_path_kernel(%arg0: i32, %arg1: i32, %arg2: memref<4x1xf32, #tpu.memory_space<vmem>>, %arg3: memref<4x512xf32, #tpu.memory_space<vmem>>, %arg4: memref<4x512xf32, #tpu.memory_space<vmem>>) attributes {dimension_semantics = [#tpu.dimension_semantics<parallel>, #tpu.dimension_semantics<parallel>], iteration_bounds = array<i64: 1, 2>, scalar_prefetch = 0 : i64, scratch_operands = 0 : i64, tpu.core_type = #tpu.core_type<tc>, window_params = [{transform_indices = @transform_0, window_bounds = array<i64: 4, 1>}, {transform_indices = @transform_1, window_bounds = array<i64: 4, 512>}, {transform_indices = @transform_2, window_bounds = array<i64: 4, 512>}]} {
    %c0 = arith.constant 0 : index
    %c0_0 = arith.constant 0 : index
    %0 = vector.load %arg3[%c0, %c0_0] : memref<4x512xf32, #tpu.memory_space<vmem>>, vector<4x512xf32>
    %c0_1 = arith.constant 0 : index
    %c0_2 = arith.constant 0 : index
    %1 = vector.load %arg2[%c0_1, %c0_2] : memref<4x1xf32, #tpu.memory_space<vmem>>, vector<4x1xf32>
    %2 = vector.broadcast %1 : vector<4x1xf32> to vector<4x512xf32>
    %3 = arith.mulf %0, %2 : vector<4x512xf32>
    %c0_3 = arith.constant 0 : index
    %c0_4 = arith.constant 0 : index
    %4 = vector.load %arg4[%c0_3, %c0_4] : memref<4x512xf32, #tpu.memory_space<vmem>>, vector<4x512xf32>
    tpu.vector_store %arg4[%c0_3, %c0_4], %3 {strides = array<i32>} : memref<4x512xf32, #tpu.memory_space<vmem>>, vector<4x512xf32>,
    return
  }
  func.func @transform_0(%arg0: i32, %arg1: i32) -> (i32, i32) {
    %c0_i32 = arith.constant 0 : i32
    %c0_i32_0 = arith.constant 0 : i32
    return %arg0, %c0_i32 : i32, i32
  }
  func.func @transform_1(%arg0: i32, %arg1: i32) -> (i32, i32) {
    %c0_i32 = arith.constant 0 : i32
    return %arg0, %arg1 : i32, i32
  }
  func.func @transform_2(%arg0: i32, %arg1: i32) -> (i32, i32) {
    %c0_i32 = arith.constant 0 : i32
    return %arg0, %arg1 : i32, i32
  }
}

</mosaic_0001>

<bundles_post_ra>
// kernel: tpu_custom_call.1
= control target key start
LH: loop header
LB: loop body
LE: loop exit
PB: predicated region body
PF: predicated region fallthrough
CT: control target
= control target key end

     0   :  { %7 = vsyncpa [#allocation3], 0  ;;  %s723_s0 = inlined_call_operand.vmem [shape: f32[4,1], index: 0, kind: input, shape index: {}]   ;;  %s724_s1 = inlined_call_operand.hbm [shape: f32[4,1024], index: 1, kind: input, shape index: {}]   ;;  %s725_s2 = inlined_call_operand.hbm [shape: f32[4,1024], index: 2, kind: output, shape index: {}]  }
   0x1   :  { %9 = vsyncpa [#allocation3 + $0x1], 0 }
   0x2   :  { %10 = vsyncpa [#allocation4], 0 }
   0x3   :  { %12 = vsyncpa [#allocation4 + $0x1], 0  ;;  %s548_s9 = smov 0   ;;  %s550_s10 = smov 0  }
   0x4   :  { %s552_s11 = smov 0   ;;  %s554_s12 = smov 0  }
   0x5   :  { %s556_s13 = smov 0   ;;  %s558_s14 = smov 0  }
   0x6 LB: > { %s332_s15 = sadd.s32 4294967295, %s527_s14   ;;  %s333_s16 = sadd.s32 4294967294, %s527_s14   ;;  %s527_s14 = sphi %s558_s14, %s18_s14   ;;  %s523_s13 = sphi %s556_s13, %s741_s13   ;;  %s519_s12 = sphi %s554_s12, %s740_s12   ;;  %s515_s11 = sphi %s552_s11, %s739_s11   ;;  %s511_s10 = sphi %s550_s10, %s738_s10   ;;  %s507_s9 = sphi %s548_s9, %s737_s9  }
   0x7   : > { %s27_s17 = sadd.s32 1, %s523_s13  ;;  %s65_s18 = sadd.s32 1, %s515_s11 }
   0x8   : > { %p28_p0 = scmp.ge.s32.totalorder %s27_s17, 2  ;;  %p72_p1 = scmp.ne.s32.totalorder %s515_s11, %s511_s10 }
   0x9   : > { %p73_p2 = scmp.eq.s32.totalorder %s527_s14, 0  ;;  %p78_p3 = scmp.ne.s32.totalorder %s511_s10, %s507_s9 }
   0xa   : > { %s743_s17 = smov (%p28_p0, %s27_s17), 0  ;;  %p79_p5 = scmp.eq.s32.totalorder %s332_s15, 0 }
   0xb   : > { %p589_p4 = por %p73_p2, %p72_p1  ;;  %s61_s20 = ssub.s32 %s523_s13, %s743_s17 }
   0xc   : > { %p104_p6 = scmp.eq.s32.totalorder %s332_s15, 1  ;;  %p63_p7 = scmp.eq.s32.totalorder %s61_s20, 0 }
   0xd   : > { %p595_p8 = por %p79_p5, %p78_p3  ;;  %p110_p10 = scmp.eq.s32.totalorder %s333_s16, 1 }
   0xe   : > { %p599_p9 = por %p104_p6, %p72_p1  ;;  %p362_p13 = scmp.lt.s32.totalorder %s527_s14, 2 }
   0xf   : > { %s604_s23 = scalar_select %p63_p7, %s515_s11, %s65_s18  }
  0x10   : > { %s729_s22 = scalar_select %p599_p9, 1, 0 }
  0x11   : > { %p606_p11 = por %p110_p10, %p78_p3  ;;  %s137_s25 = sand.u32 1, %s515_s11  }
  0x12   : > { %s337_s26 = sshll.u32 %s137_s25, 4  ;;  %s348_s27 = sshll.u32 %s523_s13, 8 }
  0x13   : > { %s730_s24 = scalar_select %p606_p11, 1, 0 }
  0x14   : > { %s617_s30 = scalar_lea.hbm %s724_s1, %s348_s27  ;;  %s141_s3 = scalar_lea.vmem [#allocation2], %s337_s26 }
  0x15   : > { %s151_s4 = sshll.u32 %s141_s3, 4  ;;  %p623_p0 = pnand %p362_p13, %p589_p4  ;;  %s619_s4 = int_to_ptr.vmem [resolvable:$true] %s151_s4 }
  0x16   : > { %s138_s6 = scalar_lea.sflag [#allocation3], %s137_s25  ;;  %s415_s7 = scalar_lea.hbm %s617_s30, 256 }
  0x17   : > { %p416_p3 = scmp.ne.s32.totalorder %s617_s30, %s415_s7  ;;  %p417_p5 = pneg %p623_p0 }
  0x18   : > { %s420_s16 = scalar_lea.hbm %s724_s1, 512  ;;  %p421_p4 = scmp.lt.u32.totalorder %s617_s30, %s724_s1 }
  0x19   : > { %p418_p6 = pnand %p417_p5, %p416_p3  ;;  %p422_p10 = scmp.lt.u32.totalorder %s420_s16, %s415_s7 }
  0x1a   : > { %p424_p12 = scmp.lt.u32.totalorder %s415_s7, %s617_s30 }
  0x1b   : > { %p419_p7 = pneg %p418_p6  ;;  %p423_p13 = por %p422_p10, %p421_p4 }
  0x1d   : > { %p425_p1 = por %p424_p12, %p423_p13 }
  0x1f   : > { %p426_p2 = pnand %p425_p1, %p419_p7 }
  0x21   : > { %429 = shalt.err (!%p426_p2)
}
  0x22   : > { %s430_s20 = scalar_lea.vmem %s619_s4, 256  ;;  %s529_s25 = smov [#allocation2]  }
  0x23   : > { %p431_p3 = scmp.ne.s32.totalorder %s619_s4, %s430_s20  ;;  %s435_s26 = sshll.u32 %s529_s25, 4  ;;  %s436_s26 = int_to_ptr.vmem [resolvable:$false] %s435_s26 }
  0x24   : > { %s437_s27 = scalar_lea.vmem %s436_s26, 512  ;;  %p438_p9 = scmp.lt.s32.totalorder %s619_s4, %s436_s26 }
  0x25   : > { %p433_p6 = pnand %p431_p3, %p417_p5  ;;  %p439_p4 = scmp.lt.s32.totalorder %s437_s27, %s430_s20 }
  0x27   : > { %p434_p11 = pneg %p433_p6  ;;  %p440_p10 = por %p439_p4, %p438_p9 }
  0x29   : > { %p441_p12 = pnand %p440_p10, %p434_p11 }
  0x2b   : > { %444 = shalt.err (!%p441_p12)
}
  0x2c   : > { %357 = dma.hbm_to_vmem [thread:$0]  (!%p623_p0), %s617_s30, 256, %s619_s4, %s138_s6  }
  0x2d   : > { %p732_p1 = scmp.lt.s32.totalorder %s527_s14, 3  ;;  %p733_p2 = scmp.ge.s32.totalorder %s527_s14, 1 }
  0x2f   : > { %p157_p5 = pnand %p733_p2, %p732_p1 }
  0x30   : > { %s659_s28 = sand.u32 (!%p157_p5), 1, %s511_s10  }
  0x31   : > { %160 = sbr.rel (%p157_p5) target bundleno = 205 (0xcd), region = 28  ;;  %s341_s29 = sshll.u32 (!%p157_p5), %s659_s28, 4 }
  0x32   : > { %s163_s3 = scalar_lea.sflag (!%p157_p5), [#allocation3], %s659_s28  ;;  %s166_s7 = scalar_lea.vmem (!%p157_p5), [#allocation2], %s341_s29 }
  0x38   : > { %498 = dma.done.wait (%p595_p8), %s163_s3, 256  }
  0x39   : > { %500 = vsyncadd (%p595_p8), %s163_s3, 4294967040  ;;  %v530_v0 = vmov 0   ;;  %v199_v1 = vld [vmem:[%s723_s0] sm:$0xf]  ;;  %v531_v2 = vmov 839922192   ;;  %v207_v4 = vlaneseq }
  0x3a   : > { %414 = vset.pattern.permute.xlu0 %v530_v0  ;;  %v205_v3 = vunpack.c.l.s4 %v531_v2  ;;  %v197_v9 = vld [vmem:[%s166_s7] sm:$0xff]  ;;  %v198_v10 = vld [vmem:[%s166_s7 + $0x8] sm:$0xff]  ;;  %s349_s21 = sshll.u32 %s519_s12, 8  ;;  %s190_s5 = scalar_lea.vmem [#allocation5], %s341_s29 }
  0x3b   : > { %202 = vperm.xlu0 %414, %v199_v1   ;;  %v208_v6 = vshrl.u32 %v207_v4, 7  ;;  %s233_s6 = sshll.u32 %s190_s5, 4  ;;  %s674_s16 = scalar_lea.hbm %s725_s2, %s349_s21  ;;  %s676_s6 = int_to_ptr.vmem [resolvable:$true] %s233_s6 }
  0x3c   : > { %v206_v5 = vunpack.c.0.s8 %v205_v3  ;;  %s217_s18 = scalar_lea.sflag [#allocation4], %s659_s28  ;;  %s445_s19 = scalar_lea.vmem %s676_s6, 256 }
  0x3d   : > { %p446_p8 = scmp.ne.s32.totalorder %s676_s6, %s445_s19  ;;  %p734_p9 = scmp.ne.s32.totalorder %s729_s22, 0 }
  0x3e   : > { %v209_v7 = vsub.s32 %v206_v5, %v208_v6  ;;  %s532_s12 = smov [#allocation5]  }
  0x3f   : > { %p447_p11 = pnand %p446_p8, %p734_p9  ;;  %s449_s20 = sshll.u32 %s532_s12, 4  ;;  %s450_s20 = int_to_ptr.vmem [resolvable:$false] %s449_s20 }
  0x40   : > { %s451_s25 = scalar_lea.vmem %s450_s20, 512  ;;  %p452_p7 = scmp.lt.s32.totalorder %s676_s6, %s450_s20 }
  0x41   : > { %p448_p0 = pneg %p447_p11  ;;  %p453_p13 = scmp.lt.s32.totalorder %s451_s25, %s445_s19 }
  0x43   : > { %p454_p3 = por %p453_p13, %p452_p7 }
  0x45   : > { %p455_p6 = pnand %p454_p3, %p448_p0 }
  0xba   : > { %v203_v8 = vpop.permute.xlu0 %202 }
  0xbb   : > { %v210_v11 = vrot.slane %v203_v8, %v209_v7 }
  0xbd   : > { %v212_v12 = vmul.f32 %v210_v11, %v197_v9  ;;  %v213_v13 = vmul.f32 %v210_v11, %v198_v10 }
  0xbf   : > { %214 = vst [vmem:[%s190_s5] sm:$0xff] %v212_v12  ;;  %215 = vst [vmem:[%s190_s5 + $0x8] sm:$0xff] %v213_v13 }
  0xc0   : > { %458 = shalt.err (!%p455_p6)
}
  0xc1   : > { %s459_s26 = scalar_lea.hbm %s674_s16, 256  ;;  %s463_s29 = scalar_lea.hbm %s725_s2, 512 }
  0xc2   : > { %p460_p4 = scmp.ne.s32.totalorder %s674_s16, %s459_s26  ;;  %p464_p1 = scmp.lt.u32.totalorder %s674_s16, %s725_s2 }
  0xc3   : > { %p465_p2 = scmp.lt.u32.totalorder %s463_s29, %s459_s26  ;;  %p467_p8 = scmp.lt.u32.totalorder %s459_s26, %s674_s16 }
  0xc4   : > { %p461_p10 = pnand %p460_p4, %p734_p9 }
  0xc5   : > { %p466_p5 = por %p465_p2, %p464_p1 }
  0xc6   : > { %p462_p12 = pneg %p461_p10 }
  0xc7   : > { %p468_p11 = por %p467_p8, %p466_p5 }
  0xc9   : > { %p469_p0 = pnand %p468_p11, %p462_p12 }
  0xcb   : > { %472 = shalt.err (!%p469_p0)
}
  0xcc   : > { %352 = dma.vmem_to_hbm [thread:$0]  (%p734_p9), %s676_s6, 256, %s674_s16, %s217_s18  }
  0xcd PF: > { %s245_s30 = sand.u32 1, %s507_s9   ;;  %p735_p7 = scmp.ne.s32.totalorder %s730_s24, 0 }
  0xce   : > { %p736_p13 = scmp.ge.s32.totalorder %s527_s14, 2  ;;  %s246_s4 = scalar_lea.sflag [#allocation4], %s245_s30 }
  0xd0   : > { %p359_p3 = pnand %p736_p13, %p735_p7 }
  0xd2   : > { %502 = dma.done.wait (!%p359_p3), %s246_s4, 256  }
  0xd3   : > { %504 = vsyncadd (!%p359_p3), %s246_s4, 4294967040  ;;  %s18_s14 = sadd.s32 1, %s527_s14   ;;  %s737_s9 = smov %s511_s10 }
  0xd4   : > { %p15_p6 = scmp.ge.s32.totalorder %s18_s14, 4   ;;  %s738_s10 = smov %s515_s11 }
  0xd5   : > { %s739_s11 = smov %s604_s23  ;;  %s740_s12 = smov %s523_s13 }
  0xd6   : > { %s741_s13 = smov %s743_s17  ;;  %17 = sbr.rel (!%p15_p6) target bundleno = 6 (0x6), region = 76 }
  0xdd   :  { %251 = vsyncpa [#allocation3], 1 }
  0xde   :  { %253 = vsyncpa [#allocation3 + $0x1], 1 }
  0xdf   :  { %254 = vsyncpa [#allocation4], 1 }
  0xe0   :  { %256 = vsyncpa [#allocation4 + $0x1], 1 }

</bundles_post_ra>
